<compile_context>
chip_gen: v5e
topology: v5e:2x2
jax: 0.10.0
libtpu: 0.0.40
codegen_flags: <defaults>
</compile_context>

<pallas_src>
import jax
import jax.numpy as jnp
from jax.experimental import pallas as pl
from jax.experimental.pallas import tpu as pltpu

_MAX_TB = 8192  # max batch-tile rows per grid step


# --------------------------------------------------------------------------
# Kernel
# --------------------------------------------------------------------------
def _mlp_kernel(x_ref, w_in_ref, b_in_ref, w_hid_ref, b_hid_ref,
                w_out_ref, b_out_ref, o_ref):
    """Fused MLP forward for one batch tile.

    x_ref     : (TB, IN)    fp32 input tile
    w_in_ref  : (IN, H)     bf16 input-layer weight ([in, out] layout)
    b_in_ref  : (1, H)      fp32
    w_hid_ref : (L, H, H)   bf16 stacked hidden weights ([in, out] layout)
    b_hid_ref : (L, 1, H)   fp32
    w_out_ref : (H, OUT)    bf16
    b_out_ref : (1, OUT)    fp32
    o_ref     : (TB, OUT)   fp32 (unpadded output)
    """
    # Input layer (no ReLU after it, matching the PyTorch module).
    h = jnp.dot(x_ref[...].astype(jnp.bfloat16), w_in_ref[...],
                preferred_element_type=jnp.float32) + b_in_ref[...]

    # Hidden layers: Linear + ReLU.  L is small and static -> static unroll.
    num_layers = w_hid_ref.shape[0]
    for i in range(num_layers):
        h = jnp.dot(h.astype(jnp.bfloat16), w_hid_ref[i],
                    preferred_element_type=jnp.float32) + b_hid_ref[i]
        h = jnp.maximum(h, 0.0)

    # Output layer (no activation), stored unpadded.
    o_ref[...] = (jnp.dot(h.astype(jnp.bfloat16), w_out_ref[...],
                          preferred_element_type=jnp.float32)
                  + b_out_ref[...]).astype(o_ref.dtype)


# --------------------------------------------------------------------------
# Param preparation (one-time, outside the hot path)
# --------------------------------------------------------------------------
def prepare_params(torch_params):
    """Convert PyTorch-convention fp32 params to kernel layout, once.

    Pre-transposes weights to [in, out], casts them to bf16 (halves weight
    HBM traffic), keeps biases fp32.
    """
    H = torch_params["w_in"].shape[0]
    L = torch_params["w_hid"].shape[0]
    return {
        "w_in":  jnp.transpose(torch_params["w_in"]).astype(jnp.bfloat16),          # (IN, H)
        "b_in":  torch_params["b_in"].reshape(1, H).astype(jnp.float32),             # (1, H)
        "w_hid": jnp.transpose(torch_params["w_hid"], (0, 2, 1)).astype(jnp.bfloat16),  # (L, H, H)
        "b_hid": torch_params["b_hid"].reshape(L, 1, H).astype(jnp.float32),          # (L, 1, H)
        "w_out": jnp.transpose(torch_params["w_out"]).astype(jnp.bfloat16),           # (H, OUT)
        "b_out": torch_params["b_out"].reshape(1, -1).astype(jnp.float32),            # (1, OUT)
    }


# --------------------------------------------------------------------------
# Grid / tile selection (TensorCore-count aware)
# --------------------------------------------------------------------------
def _num_tensorcores():
    """Best-effort TensorCores-per-chip detection (v7x: 2, v5e/v6e: 1)."""
    try:
        info = pltpu.get_tpu_info()
        for attr in ("num_cores", "core_count", "tensorcores_per_chip",
                     "num_tensorcores", "cores_per_chip"):
            v = getattr(info, attr, None)
            if isinstance(v, int) and v > 0:
                return v
    except Exception:
        pass
    try:
        v = getattr(jax.devices()[0], "num_cores", None)
        if isinstance(v, int) and v > 0:
            return v
    except Exception:
        pass
    return 1  # safe default: single grid step (correct choice on v5e/v6e)


def _pick_batch_tile(B, n_cores):
    """Pick the batch tile.

    * Small / medium B on single-TC chips -> one grid step (grid is a serial
      loop there; extra steps are pure per-step overhead).
    * Multi-TC chips (v7x) -> one tile per core when possible.
    * Large B -> biggest 8-aligned tile <= _MAX_TB that divides B and whose
      step count is a multiple of n_cores (no idle core on the last wave).
    """
    if B % 8 != 0:
        return B  # irregular batch: one full-batch step (always legal)
    if n_cores > 1 and B % (8 * n_cores) == 0 and B // n_cores <= _MAX_TB:
        return B // n_cores
    if B <= _MAX_TB:
        return B
    for tb in range(_MAX_TB, 7, -8):
        if B % tb == 0 and (B // tb) % max(n_cores, 1) == 0:
            return tb
    return B


# --------------------------------------------------------------------------
# Wrapper
# --------------------------------------------------------------------------
def simple_nn_forward(x, kparams, *, batch_tile=None):
    """Run the fused MLP kernel.  x: (B, IN) float32."""
    B, IN = x.shape
    H = kparams["w_in"].shape[1]
    L = kparams["w_hid"].shape[0]
    OUT = kparams["w_out"].shape[1]

    n_cores = _num_tensorcores()
    TB = _pick_batch_tile(B, n_cores) if batch_tile is None else batch_tile
    assert B % TB == 0, "batch must be divisible by the batch tile"

    # Advisory cost hint so XLA schedules this tiny call sensibly.
    flops = 2 * B * (IN * H + L * H * H + H * OUT)
    weight_bytes = sum(
        int(kparams[k].size) * kparams[k].dtype.itemsize
        for k in ("w_in", "b_in", "w_hid", "b_hid", "w_out", "b_out"))
    bytes_accessed = int(x.size) * x.dtype.itemsize + weight_bytes + B * OUT * 4
    cost = pl.CostEstimate(flops=flops, transcendentals=0,
                           bytes_accessed=bytes_accessed)

    return pl.pallas_call(
        _mlp_kernel,
        out_shape=jax.ShapeDtypeStruct((B, OUT), jnp.float32),
        grid_spec=pltpu.PrefetchScalarGridSpec(
            num_scalar_prefetch=0,
            grid=(B // TB,),
            in_specs=[
                pl.BlockSpec((TB, IN), lambda i: (i, 0)),       # x tile (only tiled input)
                pl.BlockSpec((IN, H), lambda i: (0, 0)),        # w_in   (grid-invariant)
                pl.BlockSpec((1, H), lambda i: (0, 0)),         # b_in
                pl.BlockSpec((L, H, H), lambda i: (0, 0, 0)),   # w_hid
                pl.BlockSpec((L, 1, H), lambda i: (0, 0, 0)),   # b_hid
                pl.BlockSpec((H, OUT), lambda i: (0, 0)),       # w_out
                pl.BlockSpec((1, OUT), lambda i: (0, 0)),       # b_out
            ],
            out_specs=pl.BlockSpec((TB, OUT), lambda i: (i, 0)),
        ),
        compiler_params=pltpu.CompilerParams(
            dimension_semantics=("parallel",)),
        cost_estimate=cost,
    )(x, kparams["w_in"], kparams["b_in"], kparams["w_hid"],
      kparams["b_hid"], kparams["w_out"], kparams["b_out"])


# --------------------------------------------------------------------------
# Init + reference
# --------------------------------------------------------------------------
def _init_params(key, num_layers, input_size, hidden_size, output_size):
    """Deterministic init, PyTorch-Linear-style uniform(-1/sqrt(fan_in), +)."""
    ks = jax.random.split(key, 6)

    def uinit(k, shape, fan_in):
        bound = 1.0 / jnp.sqrt(jnp.float32(fan_in))
        return jax.random.uniform(k, shape, jnp.float32, -bound, bound)

    return {
        "w_in":  uinit(ks[0], (hidden_size, input_size), input_size),
        "b_in":  uinit(ks[1], (hidden_size,), input_size),
        "w_hid": uinit(ks[2], (num_layers, hidden_size, hidden_size), hidden_size),
        "b_hid": uinit(ks[3], (num_layers, hidden_size), hidden_size),
        "w_out": uinit(ks[4], (output_size, hidden_size), hidden_size),
        "b_out": uinit(ks[5], (output_size,), hidden_size),
    }


def _reference_forward(x, params):
    """Pure-JAX fp32 reference matching the PyTorch module's forward()."""
    h = x @ params["w_in"].T + params["b_in"]
    for i in range(params["w_hid"].shape[0]):
        h = h @ params["w_hid"][i].T + params["b_hid"][i]
        h = jnp.maximum(h, 0.0)
    return h @ params["w_out"].T + params["b_out"]


if __name__ == "__main__":
    # Small shapes consistent with the module's forward().
    num_layers, input_size, hidden_size, output_size = 2, 16, 32, 8
    batch = 256

    key = jax.random.PRNGKey(0)
    k_x, k_p = jax.random.split(key)
    x = jax.random.normal(k_x, (batch, input_size), jnp.float32)
    torch_params = _init_params(k_p, num_layers, input_size, hidden_size,
                                output_size)

    kparams = prepare_params(torch_params)   # one-time, outside the hot path
    out = simple_nn_forward(x, kparams)
    out = jax.block_until_ready(out)

    ref = _reference_forward(x, torch_params)
    assert out.shape == (batch, output_size)
    # bf16 MXU operands with fp32 accumulation -> loosened tolerance vs fp32 ref.
    assert jnp.allclose(out, ref, atol=5e-2, rtol=5e-2), "mismatch vs reference"

    print("KERNEL_OK")
</pallas_src>

<mosaic_0001>
module attributes {stable_mosaic.version = 11 : i64} {
  func.func @_mlp_kernel(%arg0: i32, %arg1: memref<256x16xf32, #tpu.memory_space<vmem>>, %arg2: memref<16x32xbf16, #tpu.memory_space<vmem>>, %arg3: memref<1x32xf32, #tpu.memory_space<vmem>>, %arg4: memref<2x32x32xbf16, #tpu.memory_space<vmem>>, %arg5: memref<2x1x32xf32, #tpu.memory_space<vmem>>, %arg6: memref<32x8xbf16, #tpu.memory_space<vmem>>, %arg7: memref<1x8xf32, #tpu.memory_space<vmem>>, %arg8: memref<256x8xf32, #tpu.memory_space<vmem>>) attributes {dimension_semantics = [#tpu.dimension_semantics<parallel>], iteration_bounds = array<i64: 1>, scalar_prefetch = 0 : i64, scratch_operands = 0 : i64, tpu.core_type = #tpu.core_type<tc>, window_params = [{transform_indices = @transform_0, window_bounds = array<i64: 256, 16>}, {pipeline_mode = #tpu.pipeline_mode<synchronous>, transform_indices = @transform_1, window_bounds = array<i64: 16, 32>}, {pipeline_mode = #tpu.pipeline_mode<synchronous>, transform_indices = @transform_2, window_bounds = array<i64: 1, 32>}, {pipeline_mode = #tpu.pipeline_mode<synchronous>, transform_indices = @transform_3, window_bounds = array<i64: 2, 32, 32>}, {pipeline_mode = #tpu.pipeline_mode<synchronous>, transform_indices = @transform_4, window_bounds = array<i64: 2, 1, 32>}, {pipeline_mode = #tpu.pipeline_mode<synchronous>, transform_indices = @transform_5, window_bounds = array<i64: 32, 8>}, {pipeline_mode = #tpu.pipeline_mode<synchronous>, transform_indices = @transform_6, window_bounds = array<i64: 1, 8>}, {transform_indices = @transform_7, window_bounds = array<i64: 256, 8>}]} {
    %c0 = arith.constant 0 : index
    %c0_0 = arith.constant 0 : index
    %0 = vector.load %arg1[%c0, %c0_0] : memref<256x16xf32, #tpu.memory_space<vmem>>, vector<256x16xf32>
    %1 = arith.truncf %0 : vector<256x16xf32> to vector<256x16xbf16>
    %c0_1 = arith.constant 0 : index
    %c0_2 = arith.constant 0 : index
    %2 = vector.load %arg2[%c0_1, %c0_2] : memref<16x32xbf16, #tpu.memory_space<vmem>>, vector<16x32xbf16>
    %cst = arith.constant dense<0.000000e+00> : vector<256x32xf32>
    %3 = tpu.matmul %1, %2, %cst {dimension_numbers = #tpu.dot_dimension_numbers<[1], [0], [0], [1], [0, 0, 1, 1], [], []>} : vector<256x16xbf16>, vector<16x32xbf16>, vector<256x32xf32> -> vector<256x32xf32>
    %c0_3 = arith.constant 0 : index
    %c0_4 = arith.constant 0 : index
    %4 = vector.load %arg3[%c0_3, %c0_4] : memref<1x32xf32, #tpu.memory_space<vmem>>, vector<1x32xf32>
    %5 = vector.broadcast %4 : vector<1x32xf32> to vector<256x32xf32>
    %6 = arith.addf %3, %5 : vector<256x32xf32>
    %7 = arith.truncf %6 : vector<256x32xf32> to vector<256x32xbf16>
    %c0_5 = arith.constant 0 : index
    %c0_6 = arith.constant 0 : index
    %c0_7 = arith.constant 0 : index
    %8 = vector.load %arg4[%c0_5, %c0_6, %c0_7] : memref<2x32x32xbf16, #tpu.memory_space<vmem>>, vector<1x32x32xbf16>
    %9 = vector.shape_cast %8 : vector<1x32x32xbf16> to vector<32x32xbf16>
    %cst_8 = arith.constant dense<0.000000e+00> : vector<256x32xf32>
    %10 = tpu.matmul %7, %9, %cst_8 {dimension_numbers = #tpu.dot_dimension_numbers<[1], [0], [0], [1], [0, 0, 1, 1], [], []>} : vector<256x32xbf16>, vector<32x32xbf16>, vector<256x32xf32> -> vector<256x32xf32>
    %c0_9 = arith.constant 0 : index
    %c0_10 = arith.constant 0 : index
    %c0_11 = arith.constant 0 : index
    %11 = vector.load %arg5[%c0_9, %c0_10, %c0_11] : memref<2x1x32xf32, #tpu.memory_space<vmem>>, vector<1x1x32xf32>
    %12 = vector.shape_cast %11 : vector<1x1x32xf32> to vector<1x32xf32>
    %13 = vector.broadcast %12 : vector<1x32xf32> to vector<256x32xf32>
    %14 = arith.addf %10, %13 : vector<256x32xf32>
    %cst_12 = arith.constant 0.000000e+00 : f32
    %15 = vector.broadcast %cst_12 : f32 to vector<256x32xf32>
    %16 = arith.maximumf %14, %15 : vector<256x32xf32>
    %17 = arith.truncf %16 : vector<256x32xf32> to vector<256x32xbf16>
    %c1 = arith.constant 1 : index
    %c0_13 = arith.constant 0 : index
    %c0_14 = arith.constant 0 : index
    %18 = vector.load %arg4[%c1, %c0_13, %c0_14] : memref<2x32x32xbf16, #tpu.memory_space<vmem>>, vector<1x32x32xbf16>
    %19 = vector.shape_cast %18 : vector<1x32x32xbf16> to vector<32x32xbf16>
    %cst_15 = arith.constant dense<0.000000e+00> : vector<256x32xf32>
    %20 = tpu.matmul %17, %19, %cst_15 {dimension_numbers = #tpu.dot_dimension_numbers<[1], [0], [0], [1], [0, 0, 1, 1], [], []>} : vector<256x32xbf16>, vector<32x32xbf16>, vector<256x32xf32> -> vector<256x32xf32>
    %c1_16 = arith.constant 1 : index
    %c0_17 = arith.constant 0 : index
    %c0_18 = arith.constant 0 : index
    %21 = vector.load %arg5[%c1_16, %c0_17, %c0_18] : memref<2x1x32xf32, #tpu.memory_space<vmem>>, vector<1x1x32xf32>
    %22 = vector.shape_cast %21 : vector<1x1x32xf32> to vector<1x32xf32>
    %23 = vector.broadcast %22 : vector<1x32xf32> to vector<256x32xf32>
    %24 = arith.addf %20, %23 : vector<256x32xf32>
    %cst_19 = arith.constant 0.000000e+00 : f32
    %25 = vector.broadcast %cst_19 : f32 to vector<256x32xf32>
    %26 = arith.maximumf %24, %25 : vector<256x32xf32>
    %27 = arith.truncf %26 : vector<256x32xf32> to vector<256x32xbf16>
    %c0_20 = arith.constant 0 : index
    %c0_21 = arith.constant 0 : index
    %28 = vector.load %arg6[%c0_20, %c0_21] : memref<32x8xbf16, #tpu.memory_space<vmem>>, vector<32x8xbf16>
    %cst_22 = arith.constant dense<0.000000e+00> : vector<256x8xf32>
    %29 = tpu.matmul %27, %28, %cst_22 {dimension_numbers = #tpu.dot_dimension_numbers<[1], [0], [0], [1], [0, 0, 1, 1], [], []>} : vector<256x32xbf16>, vector<32x8xbf16>, vector<256x8xf32> -> vector<256x8xf32>
    %c0_23 = arith.constant 0 : index
    %c0_24 = arith.constant 0 : index
    %30 = vector.load %arg7[%c0_23, %c0_24] : memref<1x8xf32, #tpu.memory_space<vmem>>, vector<1x8xf32>
    %31 = vector.broadcast %30 : vector<1x8xf32> to vector<256x8xf32>
    %32 = arith.addf %29, %31 : vector<256x8xf32>
    %c0_25 = arith.constant 0 : index
    %c0_26 = arith.constant 0 : index
    %33 = vector.load %arg8[%c0_25, %c0_26] : memref<256x8xf32, #tpu.memory_space<vmem>>, vector<256x8xf32>
    tpu.vector_store %arg8[%c0_25, %c0_26], %32 {strides = array<i32>} : memref<256x8xf32, #tpu.memory_space<vmem>>, vector<256x8xf32>,
    return
  }
  func.func @transform_0(%arg0: i32) -> (i32, i32) {
    %c0_i32 = arith.constant 0 : i32
    %c0_i32_0 = arith.constant 0 : i32
    return %arg0, %c0_i32 : i32, i32
  }
  func.func @transform_1(%arg0: i32) -> (i32, i32) {
    %c0_i32 = arith.constant 0 : i32
    %c0_i32_0 = arith.constant 0 : i32
    %c0_i32_1 = arith.constant 0 : i32
    return %c0_i32, %c0_i32_0 : i32, i32
  }
  func.func @transform_2(%arg0: i32) -> (i32, i32) {
    %c0_i32 = arith.constant 0 : i32
    %c0_i32_0 = arith.constant 0 : i32
    %c0_i32_1 = arith.constant 0 : i32
    return %c0_i32, %c0_i32_0 : i32, i32
  }
  func.func @transform_3(%arg0: i32) -> (i32, i32, i32) {
    %c0_i32 = arith.constant 0 : i32
    %c0_i32_0 = arith.constant 0 : i32
    %c0_i32_1 = arith.constant 0 : i32
    %c0_i32_2 = arith.constant 0 : i32
    return %c0_i32, %c0_i32_0, %c0_i32_1 : i32, i32, i32
  }
  func.func @transform_4(%arg0: i32) -> (i32, i32, i32) {
    %c0_i32 = arith.constant 0 : i32
    %c0_i32_0 = arith.constant 0 : i32
    %c0_i32_1 = arith.constant 0 : i32
    %c0_i32_2 = arith.constant 0 : i32
    return %c0_i32, %c0_i32_0, %c0_i32_1 : i32, i32, i32
  }
  func.func @transform_5(%arg0: i32) -> (i32, i32) {
    %c0_i32 = arith.constant 0 : i32
    %c0_i32_0 = arith.constant 0 : i32
    %c0_i32_1 = arith.constant 0 : i32
    return %c0_i32, %c0_i32_0 : i32, i32
  }
  func.func @transform_6(%arg0: i32) -> (i32, i32) {
    %c0_i32 = arith.constant 0 : i32
    %c0_i32_0 = arith.constant 0 : i32
    %c0_i32_1 = arith.constant 0 : i32
    return %c0_i32, %c0_i32_0 : i32, i32
  }
  func.func @transform_7(%arg0: i32) -> (i32, i32) {
    %c0_i32 = arith.constant 0 : i32
    %c0_i32_0 = arith.constant 0 : i32
    return %arg0, %c0_i32 : i32, i32
  }
}

</mosaic_0001>

<bundles_post_ra>
// kernel: tpu_custom_call.1
= control target key start
LH: loop header
LB: loop body
LE: loop exit
PB: predicated region body
PF: predicated region fallthrough
CT: control target
= control target key end

     0   :  { %vm87_vm0 = vcmask 130048   ;;  %vm261_vm1 = vcmask 261120   ;;  %vm811_vm2 = vcmask 64512   ;;  %s1453_s1 = inlined_call_operand.vmem [shape: bf16[16,32], index: 1, kind: input, shape index: {}]   ;;  %s1454_s0 = inlined_call_operand.vmem [shape: f32[256,16], index: 0, kind: input, shape index: {}]   ;;  %s1455_s2 = inlined_call_operand.vmem [shape: f32[1,32], index: 2, kind: input, shape index: {}]   ;;  %s1456_s3 = inlined_call_operand.vmem [shape: bf16[2,32,32], index: 3, kind: input, shape index: {}]   ;;  %s1457_s4 = inlined_call_operand.vmem [shape: f32[2,1,32], index: 4, kind: input, shape index: {}]   ;;  %s1458_s5 = inlined_call_operand.vmem [shape: bf16[32,8], index: 5, kind: input, shape index: {}]   ;;  %s1459_s6 = inlined_call_operand.vmem [shape: f32[1,8], index: 6, kind: input, shape index: {}]   ;;  %s1460_s7 = inlined_call_operand.vmem [shape: f32[256,8], index: 7, kind: output, shape index: {}]  }
   0x1   :  { %v945_v0 = vld [vmem:[%s1453_s1] sm:$0xff]  ;;  %v28_v2 = vld [vmem:[%s1454_s0 + $0x8] sm:$0xff]  ;;  %v29_v4 = vld [vmem:[%s1454_s0 + $0x10] sm:$0xff] }
   0x2   :  { %v27_v1 = vld [vmem:[%s1454_s0] sm:$0xff]  ;;  %143 = vmatpush.bf16.msra.mxu0 %v945_v0  ;;  %v30_v5 = vld [vmem:[%s1454_s0 + $0x18] sm:$0xff]  ;;  %v32_v8 = vld [vmem:[%s1454_s0 + $0x28] sm:$0xff] }
   0x3   :  { %v59_v3 = vpack.c.bf16 %v28_v2, %v27_v1  ;;  %v60_v6 = vpack.c.bf16 %v30_v5, %v29_v4  ;;  %v31_v7 = vld [vmem:[%s1454_s0 + $0x20] sm:$0xff]  ;;  %v33_v10 = vld [vmem:[%s1454_s0 + $0x30] sm:$0xff]  ;;  %v34_v11 = vld [vmem:[%s1454_s0 + $0x38] sm:$0xff] }
   0x4   :  { %v61_v9 = vpack.c.bf16 %v32_v8, %v31_v7  ;;  %v62_v12 = vpack.c.bf16 %v34_v11, %v33_v10  ;;  %v35_v13 = vld [vmem:[%s1454_s0 + $0x40] sm:$0xff]  ;;  %v36_v14 = vld [vmem:[%s1454_s0 + $0x48] sm:$0xff]  ;;  %v37_v16 = vld [vmem:[%s1454_s0 + $0x50] sm:$0xff] }
   0x5   :  { %852 = vmatmul.msk.bf16.vlgmr.msra.gmra.mxu0 %vm87_vm0, %v59_v3  ;;  %v63_v15 = vpack.c.bf16 %v36_v14, %v35_v13  ;;  %v38_v17 = vld [vmem:[%s1454_s0 + $0x58] sm:$0xff]  ;;  %v39_v19 = vld [vmem:[%s1454_s0 + $0x60] sm:$0xff]  ;;  %v40_v20 = vld [vmem:[%s1454_s0 + $0x68] sm:$0xff] }
   0x6   :  { %v64_v18 = vpack.c.bf16 %v38_v17, %v37_v16  ;;  %v65_v21 = vpack.c.bf16 %v40_v20, %v39_v19  ;;  %v947_v22 = vld [vmem:[%s1456_s3 + $0x8] sm:$0xff]  ;;  %v946_v23 = vld [vmem:[%s1456_s3] sm:$0xff]  ;;  %v41_v24 = vld [vmem:[%s1454_s0 + $0x70] sm:$0xff] }
   0x7   :  { %316 = vmatpush.bf16.msra.mxu1 %v947_v22  ;;  %v42_v25 = vld [vmem:[%s1454_s0 + $0x78] sm:$0xff]  ;;  %v43_v27 = vld [vmem:[%s1454_s0 + $0x80] sm:$0xff]  ;;  %v44_v28 = vld [vmem:[%s1454_s0 + $0x88] sm:$0xff] }
   0x8   :  { %v66_v26 = vpack.c.bf16 %v42_v25, %v41_v24  ;;  %v67_v29 = vpack.c.bf16 %v44_v28, %v43_v27  ;;  %v1071_v31 = vld [vmem:[%s1455_s2] ss:$0 sm:$0xff]  ;;  %v45_v36 = vld [vmem:[%s1454_s0 + $0x90] sm:$0xff]  ;;  %v46_v37 = vld [vmem:[%s1454_s0 + $0x98] sm:$0xff] }
   0x9   :  { %v68_v38 = vpack.c.bf16 %v46_v37, %v45_v36  ;;  %v47_v44 = vld [vmem:[%s1454_s0 + $0xa0] sm:$0xff]  ;;  %v48_v45 = vld [vmem:[%s1454_s0 + $0xa8] sm:$0xff]  ;;  %v49_v52 = vld [vmem:[%s1454_s0 + $0xb0] sm:$0xff] }
   0xa   :  { %v69_v46 = vpack.c.bf16 %v48_v45, %v47_v44  ;;  %v50_v53 = vld [vmem:[%s1454_s0 + $0xb8] sm:$0xff]  ;;  %v51_v60 = vld [vmem:[%s1454_s0 + $0xc0] sm:$0xff]  ;;  %v52_v61 = vld [vmem:[%s1454_s0 + $0xc8] sm:$0xff] }
   0xb   :  { %317 = vmatpush.bf16.msra.mxu1 %v946_v23  ;;  %v70_v54 = vpack.c.bf16 %v50_v53, %v49_v52  ;;  %v71_v62 = vpack.c.bf16 %v52_v61, %v51_v60  ;;  %v53_v4 = vld [vmem:[%s1454_s0 + $0xd0] sm:$0xff]  ;;  %v54_v5 = vld [vmem:[%s1454_s0 + $0xd8] sm:$0xff]  ;;  %v56_v13 = vld [vmem:[%s1454_s0 + $0xe8] sm:$0xff] }
   0xc   :  { %v57_v20 = vld [vmem:[%s1454_s0 + $0xf0] sm:$0xff]  ;;  %v949_v24 = vld [vmem:[%s1456_s3 + $0x18] sm:$0xff]  ;;  %v1157_v37 = vld [vmem:[%s1457_s4] ss:$0 sm:$0xff] }
   0xd   :  { %523 = vmatpush.bf16.msra.mxu2 %v949_v24  ;;  %v948_v25 = vld [vmem:[%s1456_s3 + $0x10] sm:$0xff] }
  0x11   :  { %524 = vmatpush.bf16.msra.mxu2 %v948_v25 }
  0x15   :  { %853 = vmatmul.msk.bf16.gmra.mxu0 %vm87_vm0, %v60_v6  ;;  %v72_v6 = vpack.c.bf16 %v54_v5, %v53_v4 }
  0x25   :  { %854 = vmatmul.msk.bf16.gmra.mxu0 %vm87_vm0, %v61_v9 }
  0x35   :  { %855 = vmatmul.msk.bf16.gmra.mxu0 %vm87_vm0, %v62_v12  ;;  %v55_v12 = vld [vmem:[%s1454_s0 + $0xe0] sm:$0xff] }
  0x36   :  { %v73_v14 = vpack.c.bf16 %v56_v13, %v55_v12 }
  0x45   :  { %856 = vmatmul.msk.bf16.gmra.mxu0 %vm87_vm0, %v63_v15 }
  0x55   :  { %857 = vmatmul.msk.bf16.gmra.mxu0 %vm87_vm0, %v64_v18 }
  0x65   :  { %858 = vmatmul.msk.bf16.gmra.mxu0 %vm87_vm0, %v65_v21  ;;  %v58_v21 = vld [vmem:[%s1454_s0 + $0xf8] sm:$0xff] }
  0x66   :  { %v74_v22 = vpack.c.bf16 %v58_v21, %v57_v20 }
  0x75   :  { %859 = vmatmul.msk.bf16.gmra.mxu0 %vm87_vm0, %v66_v26 }
  0x82   :  { %v145_v30 = vpop.f32.mrf.mxu0 }
  0x83   :  { %v146_v33 = vadd.f32 %v1071_v31, %v145_v30 }
  0x85   :  { %860 = vmatmul.msk.bf16.gmra.mxu0 %vm87_vm0, %v67_v29 }
  0x8a   :  { %v147_v32 = vpop.f32.mrf.mxu0 }
  0x8b   :  { %v148_v34 = vadd.f32 %v1071_v31, %v147_v32 }
  0x8d   :  { %v225_v35 = vpack.c.bf16 %v148_v34, %v146_v33 }
  0x8f   :  { %876 = vmatmul.msk.bf16.vlgmr.msra.gmra.mxu1 %vm261_vm1, %v225_v35 }
  0x92   :  { %v150_v39 = vpop.f32.mrf.mxu0 }
  0x93   :  { %v151_v41 = vadd.f32 %v1071_v31, %v150_v39 }
  0x95   :  { %861 = vmatmul.msk.bf16.gmra.mxu0 %vm87_vm0, %v68_v38 }
  0x9a   :  { %v152_v40 = vpop.f32.mrf.mxu0 }
  0x9b   :  { %v153_v42 = vadd.f32 %v1071_v31, %v152_v40 }
  0x9d   :  { %v226_v43 = vpack.c.bf16 %v153_v42, %v151_v41 }
  0x9f   :  { %877 = vmatmul.msk.bf16.gmra.mxu1 %vm261_vm1, %v226_v43 }
  0xa2   :  { %v155_v47 = vpop.f32.mrf.mxu0 }
  0xa3   :  { %v156_v49 = vadd.f32 %v1071_v31, %v155_v47 }
  0xa5   :  { %862 = vmatmul.msk.bf16.gmra.mxu0 %vm87_vm0, %v69_v46 }
  0xaa   :  { %v157_v48 = vpop.f32.mrf.mxu0 }
  0xab   :  { %v158_v50 = vadd.f32 %v1071_v31, %v157_v48 }
  0xad   :  { %v227_v51 = vpack.c.bf16 %v158_v50, %v156_v49 }
  0xaf   :  { %878 = vmatmul.msk.bf16.gmra.mxu1 %vm261_vm1, %v227_v51 }
  0xb2   :  { %v160_v55 = vpop.f32.mrf.mxu0 }
  0xb3   :  { %v161_v57 = vadd.f32 %v1071_v31, %v160_v55 }
  0xb5   :  { %863 = vmatmul.msk.bf16.gmra.mxu0 %vm87_vm0, %v70_v54 }
  0xba   :  { %v162_v56 = vpop.f32.mrf.mxu0 }
  0xbb   :  { %v163_v58 = vadd.f32 %v1071_v31, %v162_v56 }
  0xbd   :  { %v228_v59 = vpack.c.bf16 %v163_v58, %v161_v57 }
  0xbf   :  { %879 = vmatmul.msk.bf16.gmra.mxu1 %vm261_vm1, %v228_v59 }
  0xc2   :  { %v165_v63 = vpop.f32.mrf.mxu0 }
  0xc3   :  { %v166_v1 = vadd.f32 %v1071_v31, %v165_v63 }
  0xc5   :  { %864 = vmatmul.msk.bf16.gmra.mxu0 %vm87_vm0, %v71_v62 }
  0xca   :  { %v167_v0 = vpop.f32.mrf.mxu0 }
  0xcb   :  { %v168_v2 = vadd.f32 %v1071_v31, %v167_v0 }
  0xcd   :  { %v229_v3 = vpack.c.bf16 %v168_v2, %v166_v1 }
  0xcf   :  { %880 = vmatmul.msk.bf16.gmra.mxu1 %vm261_vm1, %v229_v3 }
  0xd2   :  { %v170_v7 = vpop.f32.mrf.mxu0 }
  0xd3   :  { %v171_v9 = vadd.f32 %v1071_v31, %v170_v7 }
  0xd5   :  { %865 = vmatmul.msk.bf16.gmra.mxu0 %vm87_vm0, %v72_v6 }
  0xda   :  { %v172_v8 = vpop.f32.mrf.mxu0 }
  0xdb   :  { %v173_v10 = vadd.f32 %v1071_v31, %v172_v8 }
  0xdd   :  { %v230_v11 = vpack.c.bf16 %v173_v10, %v171_v9 }
  0xdf   :  { %881 = vmatmul.msk.bf16.gmra.mxu1 %vm261_vm1, %v230_v11 }
  0xe2   :  { %v175_v15 = vpop.f32.mrf.mxu0 }
  0xe3   :  { %v176_v17 = vadd.f32 %v1071_v31, %v175_v15 }
  0xe5   :  { %866 = vmatmul.msk.bf16.gmra.mxu0 %vm87_vm0, %v73_v14 }
  0xea   :  { %v177_v16 = vpop.f32.mrf.mxu0 }
  0xeb   :  { %v178_v18 = vadd.f32 %v1071_v31, %v177_v16 }
  0xed   :  { %v231_v19 = vpack.c.bf16 %v178_v18, %v176_v17 }
  0xef   :  { %882 = vmatmul.msk.bf16.gmra.mxu1 %vm261_vm1, %v231_v19 }
  0xf2   :  { %v180_v23 = vpop.f32.mrf.mxu0 }
  0xf3   :  { %v181_v27 = vadd.f32 %v1071_v31, %v180_v23 }
  0xf5   :  { %867 = vmatmul.msk.bf16.gmra.mxu0 %vm87_vm0, %v74_v22 }
  0xfa   :  { %v182_v26 = vpop.f32.mrf.mxu0 }
  0xfb   :  { %v183_v28 = vadd.f32 %v1071_v31, %v182_v26 }
  0xfd   :  { %v232_v29 = vpack.c.bf16 %v183_v28, %v181_v27 }
  0xff   :  { %883 = vmatmul.msk.bf16.gmra.mxu1 %vm261_vm1, %v232_v29 }
 0x102   :  { %v185_v30 = vpop.f32.mrf.mxu0 }
 0x103   :  { %v186_v33 = vadd.f32 %v1071_v31, %v185_v30 }
 0x10a   :  { %v187_v32 = vpop.f32.mrf.mxu0 }
 0x10b   :  { %v188_v34 = vadd.f32 %v1071_v31, %v187_v32 }
 0x10c   :  { %v319_v35 = vpop.f32.mrf.mxu1 }
 0x10d   :  { %v233_v36 = vpack.c.bf16 %v188_v34, %v186_v33  ;;  %v320_v39 = vadd.f32 %v1157_v37, %v319_v35 }
 0x10f   :  { %884 = vmatmul.msk.bf16.gmra.mxu1 %vm261_vm1, %v233_v36  ;;  %v399_v42 = vmax.f32 %v320_v39, 0.0 }
 0x112   :  { %v190_v38 = vpop.f32.mrf.mxu0 }
 0x113   :  { %v191_v46 = vadd.f32 %v1071_v31, %v190_v38 }
 0x114   :  { %v321_v40 = vpop.f32.mrf.mxu1 }
 0x115   :  { %v322_v41 = vadd.f32 %v1157_v37, %v321_v40 }
 0x117   :  { %v400_v43 = vmax.f32 %v322_v41, 0.0 }
 0x119   :  { %v431_v44 = vpack.c.bf16 %v400_v43, %v399_v42 }
 0x11a   :  { %v192_v45 = vpop.f32.mrf.mxu0 }
 0x11b   :  { %v193_v47 = vadd.f32 %v1071_v31, %v192_v45  ;;  %905 = vmatmul.msk.bf16.vlgmr.msra.gmra.mxu2 %vm261_vm1, %v431_v44 }
 0x11c   :  { %v324_v48 = vpop.f32.mrf.mxu1 }
 0x11d   :  { %v234_v49 = vpack.c.bf16 %v193_v47, %v191_v46  ;;  %v325_v51 = vadd.f32 %v1157_v37, %v324_v48 }
 0x11f   :  { %885 = vmatmul.msk.bf16.gmra.mxu1 %vm261_vm1, %v234_v49  ;;  %v401_v54 = vmax.f32 %v325_v51, 0.0 }
 0x122   :  { %v195_v50 = vpop.f32.mrf.mxu0 }
 0x123   :  { %v196_v58 = vadd.f32 %v1071_v31, %v195_v50 }
 0x124   :  { %v326_v52 = vpop.f32.mrf.mxu1 }
 0x125   :  { %v327_v53 = vadd.f32 %v1157_v37, %v326_v52 }
 0x127   :  { %v402_v55 = vmax.f32 %v327_v53, 0.0 }
 0x129   :  { %v432_v56 = vpack.c.bf16 %v402_v55, %v401_v54 }
 0x12a   :  { %v197_v57 = vpop.f32.mrf.mxu0 }
 0x12b   :  { %v198_v59 = vadd.f32 %v1071_v31, %v197_v57  ;;  %906 = vmatmul.msk.bf16.gmra.mxu2 %vm261_vm1, %v432_v56 }
 0x12c   :  { %v329_v60 = vpop.f32.mrf.mxu1 }
 0x12d   :  { %v235_v61 = vpack.c.bf16 %v198_v59, %v196_v58  ;;  %v330_v63 = vadd.f32 %v1157_v37, %v329_v60 }
 0x12f   :  { %886 = vmatmul.msk.bf16.gmra.mxu1 %vm261_vm1, %v235_v61  ;;  %v403_v2 = vmax.f32 %v330_v63, 0.0 }
 0x132   :  { %v200_v62 = vpop.f32.mrf.mxu0 }
 0x133   :  { %v201_v6 = vadd.f32 %v1071_v31, %v200_v62  ;;  %v951_v62 = vld [vmem:[%s1458_s5 + $0x8] sm:$0xff] }
 0x134   :  { %v331_v0 = vpop.f32.mrf.mxu1  ;;  %728 = vmatpush.bf16.msra.mxu3 %v951_v62 }
 0x135   :  { %v332_v1 = vadd.f32 %v1157_v37, %v331_v0 }
 0x137   :  { %v404_v3 = vmax.f32 %v332_v1, 0.0 }
 0x139   :  { %v433_v4 = vpack.c.bf16 %v404_v3, %v403_v2 }
 0x13a   :  { %v202_v5 = vpop.f32.mrf.mxu0 }
 0x13b   :  { %v203_v7 = vadd.f32 %v1071_v31, %v202_v5  ;;  %907 = vmatmul.msk.bf16.gmra.mxu2 %vm261_vm1, %v433_v4 }
 0x13c   :  { %v334_v8 = vpop.f32.mrf.mxu1 }
 0x13d   :  { %v236_v9 = vpack.c.bf16 %v203_v7, %v201_v6  ;;  %v335_v11 = vadd.f32 %v1157_v37, %v334_v8 }
 0x13f   :  { %887 = vmatmul.msk.bf16.gmra.mxu1 %vm261_vm1, %v236_v9  ;;  %v405_v14 = vmax.f32 %v335_v11, 0.0 }
 0x142   :  { %v205_v10 = vpop.f32.mrf.mxu0 }
 0x143   :  { %v206_v18 = vadd.f32 %v1071_v31, %v205_v10 }
 0x144   :  { %v336_v12 = vpop.f32.mrf.mxu1 }
 0x145   :  { %v337_v13 = vadd.f32 %v1157_v37, %v336_v12  ;;  %v1217_v12 = vld [vmem:[%s1457_s4 + $0x1] ss:$0 sm:$0xff] }
 0x147   :  { %v406_v15 = vmax.f32 %v337_v13, 0.0 }
 0x149   :  { %v434_v16 = vpack.c.bf16 %v406_v15, %v405_v14 }
 0x14a   :  { %v207_v17 = vpop.f32.mrf.mxu0 }
 0x14b   :  { %v208_v19 = vadd.f32 %v1071_v31, %v207_v17  ;;  %908 = vmatmul.msk.bf16.gmra.mxu2 %vm261_vm1, %v434_v16 }
 0x14c   :  { %v339_v20 = vpop.f32.mrf.mxu1 }
 0x14d   :  { %v237_v21 = vpack.c.bf16 %v208_v19, %v206_v18  ;;  %v340_v23 = vadd.f32 %v1157_v37, %v339_v20 }
 0x14f   :  { %888 = vmatmul.msk.bf16.gmra.mxu1 %vm261_vm1, %v237_v21  ;;  %v407_v26 = vmax.f32 %v340_v23, 0.0 }
 0x152   :  { %v210_v22 = vpop.f32.mrf.mxu0 }
 0x153   :  { %v211_v30 = vadd.f32 %v1071_v31, %v210_v22 }
 0x154   :  { %v341_v24 = vpop.f32.mrf.mxu1 }
 0x155   :  { %v342_v25 = vadd.f32 %v1157_v37, %v341_v24 }
 0x157   :  { %v408_v27 = vmax.f32 %v342_v25, 0.0 }
 0x159   :  { %v435_v28 = vpack.c.bf16 %v408_v27, %v407_v26 }
 0x15a   :  { %v212_v29 = vpop.f32.mrf.mxu0 }
 0x15b   :  { %v213_v32 = vadd.f32 %v1071_v31, %v212_v29  ;;  %909 = vmatmul.msk.bf16.gmra.mxu2 %vm261_vm1, %v435_v28 }
 0x15c   :  { %v344_v33 = vpop.f32.mrf.mxu1 }
 0x15d   :  { %v238_v34 = vpack.c.bf16 %v213_v32, %v211_v30  ;;  %v345_v36 = vadd.f32 %v1157_v37, %v344_v33 }
 0x15f   :  { %889 = vmatmul.msk.bf16.gmra.mxu1 %vm261_vm1, %v238_v34  ;;  %v409_v40 = vmax.f32 %v345_v36, 0.0 }
 0x162   :  { %v215_v35 = vpop.f32.mrf.mxu0 }
 0x163   :  { %v216_v44 = vadd.f32 %v1071_v31, %v215_v35 }
 0x164   :  { %v346_v38 = vpop.f32.mrf.mxu1 }
 0x165   :  { %v347_v39 = vadd.f32 %v1157_v37, %v346_v38 }
 0x167   :  { %v410_v41 = vmax.f32 %v347_v39, 0.0 }
 0x169   :  { %v436_v42 = vpack.c.bf16 %v410_v41, %v409_v40 }
 0x16a   :  { %v217_v43 = vpop.f32.mrf.mxu0 }
 0x16b   :  { %v218_v45 = vadd.f32 %v1071_v31, %v217_v43  ;;  %910 = vmatmul.msk.bf16.gmra.mxu2 %vm261_vm1, %v436_v42 }
 0x16c   :  { %v349_v46 = vpop.f32.mrf.mxu1 }
 0x16d   :  { %v239_v47 = vpack.c.bf16 %v218_v45, %v216_v44  ;;  %v350_v49 = vadd.f32 %v1157_v37, %v349_v46 }
 0x16f   :  { %890 = vmatmul.msk.bf16.gmra.mxu1 %vm261_vm1, %v239_v47  ;;  %v411_v52 = vmax.f32 %v350_v49, 0.0 }
 0x172   :  { %v220_v48 = vpop.f32.mrf.mxu0 }
 0x173   :  { %v221_v56 = vadd.f32 %v1071_v31, %v220_v48 }
 0x174   :  { %v351_v50 = vpop.f32.mrf.mxu1 }
 0x175   :  { %v352_v51 = vadd.f32 %v1157_v37, %v351_v50 }
 0x177   :  { %v412_v53 = vmax.f32 %v352_v51, 0.0 }
 0x179   :  { %v437_v54 = vpack.c.bf16 %v412_v53, %v411_v52 }
 0x17a   :  { %v222_v55 = vpop.f32.mrf.mxu0 }
 0x17b   :  { %v223_v57 = vadd.f32 %v1071_v31, %v222_v55  ;;  %911 = vmatmul.msk.bf16.gmra.mxu2 %vm261_vm1, %v437_v54  ;;  %v950_v31 = vld [vmem:[%s1458_s5] sm:$0xff] }
 0x17c   :  { %v354_v58 = vpop.f32.mrf.mxu1  ;;  %729 = vmatpush.bf16.msra.mxu3 %v950_v31 }
 0x17d   :  { %v240_v59 = vpack.c.bf16 %v223_v57, %v221_v56  ;;  %v355_v60 = vadd.f32 %v1157_v37, %v354_v58 }
 0x17f   :  { %891 = vmatmul.msk.bf16.gmra.mxu1 %vm261_vm1, %v240_v59  ;;  %v413_v0 = vmax.f32 %v355_v60, 0.0 }
 0x184   :  { %v356_v61 = vpop.f32.mrf.mxu1 }
 0x185   :  { %v357_v63 = vadd.f32 %v1157_v37, %v356_v61 }
 0x187   :  { %v414_v1 = vmax.f32 %v357_v63, 0.0 }
 0x189   :  { %v438_v2 = vpack.c.bf16 %v414_v1, %v413_v0 }
 0x18b   :  { %912 = vmatmul.msk.bf16.gmra.mxu2 %vm261_vm1, %v438_v2 }
 0x18c   :  { %v359_v3 = vpop.f32.mrf.mxu1 }
 0x18d   :  { %v360_v4 = vadd.f32 %v1157_v37, %v359_v3 }
 0x18f   :  { %v415_v7 = vmax.f32 %v360_v4, 0.0 }
 0x194   :  { %v361_v5 = vpop.f32.mrf.mxu1 }
 0x195   :  { %v362_v6 = vadd.f32 %v1157_v37, %v361_v5 }
 0x197   :  { %v416_v8 = vmax.f32 %v362_v6, 0.0 }
 0x199   :  { %v439_v9 = vpack.c.bf16 %v416_v8, %v415_v7 }
 0x19b   :  { %913 = vmatmul.msk.bf16.gmra.mxu2 %vm261_vm1, %v439_v9 }
 0x19c   :  { %v364_v10 = vpop.f32.mrf.mxu1 }
 0x19d   :  { %v365_v13 = vadd.f32 %v1157_v37, %v364_v10 }
 0x19e   :  { %v526_v11 = vpop.f32.mrf.mxu2 }
 0x19f   :  { %v527_v15 = vadd.f32 %v1217_v12, %v526_v11  ;;  %v417_v18 = vmax.f32 %v365_v13, 0.0 }
 0x1a1   :  { %v606_v21 = vmax.f32 %v527_v15, 0.0 }
 0x1a4   :  { %v366_v14 = vpop.f32.mrf.mxu1 }
 0x1a5   :  { %v367_v16 = vadd.f32 %v1157_v37, %v366_v14 }
 0x1a6   :  { %v528_v17 = vpop.f32.mrf.mxu2 }
 0x1a7   :  { %v418_v19 = vmax.f32 %v367_v16, 0.0  ;;  %v529_v20 = vadd.f32 %v1217_v12, %v528_v17 }
 0x1a9   :  { %v440_v22 = vpack.c.bf16 %v418_v19, %v417_v18  ;;  %v607_v23 = vmax.f32 %v529_v20, 0.0 }
 0x1ab   :  { %914 = vmatmul.msk.bf16.gmra.mxu2 %vm261_vm1, %v440_v22  ;;  %v638_v24 = vpack.c.bf16 %v607_v23, %v606_v21 }
 0x1ac   :  { %v369_v25 = vpop.f32.mrf.mxu1 }
 0x1ad   :  { %929 = vmatmul.msk.bf16.vlgmr.msra.gmra.mxu3 %vm261_vm1, %v638_v24  ;;  %v370_v27 = vadd.f32 %v1157_v37, %v369_v25 }
 0x1ae   :  { %v531_v26 = vpop.f32.mrf.mxu2 }
 0x1af   :  { %v532_v29 = vadd.f32 %v1217_v12, %v531_v26  ;;  %v419_v33 = vmax.f32 %v370_v27, 0.0 }
 0x1b1   :  { %v608_v36 = vmax.f32 %v532_v29, 0.0 }
 0x1b4   :  { %v371_v28 = vpop.f32.mrf.mxu1 }
 0x1b5   :  { %v372_v30 = vadd.f32 %v1157_v37, %v371_v28 }
 0x1b6   :  { %v533_v32 = vpop.f32.mrf.mxu2 }
 0x1b7   :  { %v420_v34 = vmax.f32 %v372_v30, 0.0  ;;  %v534_v35 = vadd.f32 %v1217_v12, %v533_v32 }
 0x1b9   :  { %v441_v38 = vpack.c.bf16 %v420_v34, %v419_v33  ;;  %v609_v39 = vmax.f32 %v534_v35, 0.0 }
 0x1bb   :  { %915 = vmatmul.msk.bf16.gmra.mxu2 %vm261_vm1, %v441_v38  ;;  %v639_v40 = vpack.c.bf16 %v609_v39, %v608_v36 }
 0x1bc   :  { %v374_v41 = vpop.f32.mrf.mxu1 }
 0x1bd   :  { %930 = vmatmul.msk.bf16.gmra.mxu3 %vm261_vm1, %v639_v40  ;;  %v375_v43 = vadd.f32 %v1157_v37, %v374_v41 }
 0x1be   :  { %v536_v42 = vpop.f32.mrf.mxu2 }
 0x1bf   :  { %v537_v45 = vadd.f32 %v1217_v12, %v536_v42  ;;  %v421_v48 = vmax.f32 %v375_v43, 0.0 }
 0x1c1   :  { %v610_v51 = vmax.f32 %v537_v45, 0.0 }
 0x1c4   :  { %v376_v44 = vpop.f32.mrf.mxu1 }
 0x1c5   :  { %v377_v46 = vadd.f32 %v1157_v37, %v376_v44 }
 0x1c6   :  { %v538_v47 = vpop.f32.mrf.mxu2 }
 0x1c7   :  { %v422_v49 = vmax.f32 %v377_v46, 0.0  ;;  %v539_v50 = vadd.f32 %v1217_v12, %v538_v47 }
 0x1c9   :  { %v442_v52 = vpack.c.bf16 %v422_v49, %v421_v48  ;;  %v611_v53 = vmax.f32 %v539_v50, 0.0 }
 0x1cb   :  { %916 = vmatmul.msk.bf16.gmra.mxu2 %vm261_vm1, %v442_v52  ;;  %v640_v54 = vpack.c.bf16 %v611_v53, %v610_v51 }
 0x1cc   :  { %v379_v55 = vpop.f32.mrf.mxu1 }
 0x1cd   :  { %931 = vmatmul.msk.bf16.gmra.mxu3 %vm261_vm1, %v640_v54  ;;  %v380_v57 = vadd.f32 %v1157_v37, %v379_v55 }
 0x1ce   :  { %v541_v56 = vpop.f32.mrf.mxu2 }
 0x1cf   :  { %v542_v59 = vadd.f32 %v1217_v12, %v541_v56  ;;  %v423_v62 = vmax.f32 %v380_v57, 0.0 }
 0x1d1   :  { %v612_v1 = vmax.f32 %v542_v59, 0.0 }
 0x1d4   :  { %v381_v58 = vpop.f32.mrf.mxu1 }
 0x1d5   :  { %v382_v60 = vadd.f32 %v1157_v37, %v381_v58 }
 0x1d6   :  { %v543_v61 = vpop.f32.mrf.mxu2 }
 0x1d7   :  { %v424_v63 = vmax.f32 %v382_v60, 0.0  ;;  %v544_v0 = vadd.f32 %v1217_v12, %v543_v61 }
 0x1d9   :  { %v443_v31 = vpack.c.bf16 %v424_v63, %v423_v62  ;;  %v613_v2 = vmax.f32 %v544_v0, 0.0  ;;  %v1270_v62 = vld [vmem:[%s1459_s6] ss:$0 sm:$0xff] }
 0x1db   :  { %917 = vmatmul.msk.bf16.gmra.mxu2 %vm261_vm1, %v443_v31  ;;  %v641_v3 = vpack.c.bf16 %v613_v2, %v612_v1 }
 0x1dc   :  { %v384_v4 = vpop.f32.mrf.mxu1 }
 0x1dd   :  { %932 = vmatmul.msk.bf16.gmra.mxu3 %vm261_vm1, %v641_v3  ;;  %v385_v6 = vadd.f32 %v1157_v37, %v384_v4 }
 0x1de   :  { %v546_v5 = vpop.f32.mrf.mxu2 }
 0x1df   :  { %v547_v8 = vadd.f32 %v1217_v12, %v546_v5  ;;  %v425_v11 = vmax.f32 %v385_v6, 0.0 }
 0x1e1   :  { %v614_v15 = vmax.f32 %v547_v8, 0.0 }
 0x1e4   :  { %v386_v7 = vpop.f32.mrf.mxu1 }
 0x1e5   :  { %v387_v9 = vadd.f32 %v1157_v37, %v386_v7 }
 0x1e6   :  { %v548_v10 = vpop.f32.mrf.mxu2 }
 0x1e7   :  { %v426_v13 = vmax.f32 %v387_v9, 0.0  ;;  %v549_v14 = vadd.f32 %v1217_v12, %v548_v10 }
 0x1e9   :  { %v444_v16 = vpack.c.bf16 %v426_v13, %v425_v11  ;;  %v615_v17 = vmax.f32 %v549_v14, 0.0 }
 0x1eb   :  { %v642_v18 = vpack.c.bf16 %v615_v17, %v614_v15  ;;  %918 = vmatmul.msk.bf16.gmra.mxu2 %vm261_vm1, %v444_v16 }
 0x1ec   :  { %v389_v19 = vpop.f32.mrf.mxu1 }
 0x1ed   :  { %933 = vmatmul.msk.bf16.gmra.mxu3 %vm261_vm1, %v642_v18  ;;  %v390_v21 = vadd.f32 %v1157_v37, %v389_v19 }
 0x1ee   :  { %v551_v20 = vpop.f32.mrf.mxu2 }
 0x1ef   :  { %v552_v23 = vadd.f32 %v1217_v12, %v551_v20  ;;  %v427_v26 = vmax.f32 %v390_v21, 0.0 }
 0x1f1   :  { %v616_v29 = vmax.f32 %v552_v23, 0.0 }
 0x1f4   :  { %v391_v22 = vpop.f32.mrf.mxu1 }
 0x1f5   :  { %v392_v24 = vadd.f32 %v1157_v37, %v391_v22 }
 0x1f6   :  { %v553_v25 = vpop.f32.mrf.mxu2 }
 0x1f7   :  { %v428_v27 = vmax.f32 %v392_v24, 0.0  ;;  %v554_v28 = vadd.f32 %v1217_v12, %v553_v25 }
 0x1f9   :  { %v445_v30 = vpack.c.bf16 %v428_v27, %v427_v26  ;;  %v617_v32 = vmax.f32 %v554_v28, 0.0 }
 0x1fb   :  { %v643_v33 = vpack.c.bf16 %v617_v32, %v616_v29  ;;  %919 = vmatmul.msk.bf16.gmra.mxu2 %vm261_vm1, %v445_v30 }
 0x1fc   :  { %v394_v34 = vpop.f32.mrf.mxu1 }
 0x1fd   :  { %934 = vmatmul.msk.bf16.gmra.mxu3 %vm261_vm1, %v643_v33  ;;  %v395_v36 = vadd.f32 %v1157_v37, %v394_v34 }
 0x1fe   :  { %v556_v35 = vpop.f32.mrf.mxu2 }
 0x1ff   :  { %v557_v39 = vadd.f32 %v1217_v12, %v556_v35  ;;  %v429_v42 = vmax.f32 %v395_v36, 0.0 }
 0x201   :  { %v618_v45 = vmax.f32 %v557_v39, 0.0 }
 0x204   :  { %v396_v38 = vpop.f32.mrf.mxu1 }
 0x205   :  { %v397_v40 = vadd.f32 %v1157_v37, %v396_v38 }
 0x206   :  { %v558_v41 = vpop.f32.mrf.mxu2 }
 0x207   :  { %v430_v43 = vmax.f32 %v397_v40, 0.0  ;;  %v559_v44 = vadd.f32 %v1217_v12, %v558_v41 }
 0x209   :  { %v446_v46 = vpack.c.bf16 %v430_v43, %v429_v42  ;;  %v619_v47 = vmax.f32 %v559_v44, 0.0 }
 0x20b   :  { %v644_v48 = vpack.c.bf16 %v619_v47, %v618_v45  ;;  %920 = vmatmul.msk.bf16.gmra.mxu2 %vm261_vm1, %v446_v46 }
 0x20d   :  { %935 = vmatmul.msk.bf16.gmra.mxu3 %vm261_vm1, %v644_v48 }
 0x20e   :  { %v561_v49 = vpop.f32.mrf.mxu2 }
 0x20f   :  { %v562_v50 = vadd.f32 %v1217_v12, %v561_v49 }
 0x211   :  { %v620_v37 = vmax.f32 %v562_v50, 0.0 }
 0x216   :  { %v563_v51 = vpop.f32.mrf.mxu2 }
 0x217   :  { %v564_v52 = vadd.f32 %v1217_v12, %v563_v51 }
 0x219   :  { %v621_v53 = vmax.f32 %v564_v52, 0.0 }
 0x21b   :  { %v645_v54 = vpack.c.bf16 %v621_v53, %v620_v37 }
 0x21d   :  { %936 = vmatmul.msk.bf16.gmra.mxu3 %vm261_vm1, %v645_v54 }
 0x21e   :  { %v566_v55 = vpop.f32.mrf.mxu2 }
 0x21f   :  { %v567_v56 = vadd.f32 %v1217_v12, %v566_v55 }
 0x221   :  { %v622_v59 = vmax.f32 %v567_v56, 0.0 }
 0x226   :  { %v568_v57 = vpop.f32.mrf.mxu2 }
 0x227   :  { %v569_v58 = vadd.f32 %v1217_v12, %v568_v57 }
 0x229   :  { %v623_v60 = vmax.f32 %v569_v58, 0.0 }
 0x22b   :  { %v646_v61 = vpack.c.bf16 %v623_v60, %v622_v59 }
 0x22d   :  { %937 = vmatmul.msk.bf16.gmra.mxu3 %vm261_vm1, %v646_v61 }
 0x22e   :  { %v571_v63 = vpop.f32.mrf.mxu2 }
 0x22f   :  { %v572_v31 = vadd.f32 %v1217_v12, %v571_v63 }
 0x230   :  { %v731_v0 = vpop.f32.mrf.mxu3 }
 0x231   :  { %v732_v1 = vadd.f32 %v1270_v62, %v731_v0  ;;  %v624_v5 = vmax.f32 %v572_v31, 0.0 }
 0x233   :  { %812 = vst.msk [vmem:[%s1460_s7] sm:$0xff] %vm811_vm2, %v732_v1 }
 0x236   :  { %v573_v2 = vpop.f32.mrf.mxu2 }
 0x237   :  { %v574_v3 = vadd.f32 %v1217_v12, %v573_v2 }
 0x238   :  { %v733_v4 = vpop.f32.mrf.mxu3 }
 0x239   :  { %v625_v6 = vmax.f32 %v574_v3, 0.0  ;;  %v734_v7 = vadd.f32 %v1270_v62, %v733_v4 }
 0x23b   :  { %v647_v8 = vpack.c.bf16 %v625_v6, %v624_v5  ;;  %813 = vst.msk [vmem:[%s1460_s7 + $0x8] sm:$0xff] %vm811_vm2, %v734_v7 }
 0x23d   :  { %938 = vmatmul.msk.bf16.gmra.mxu3 %vm261_vm1, %v647_v8 }
 0x23e   :  { %v576_v9 = vpop.f32.mrf.mxu2 }
 0x23f   :  { %v577_v13 = vadd.f32 %v1217_v12, %v576_v9 }
 0x240   :  { %v736_v10 = vpop.f32.mrf.mxu3 }
 0x241   :  { %v737_v11 = vadd.f32 %v1270_v62, %v736_v10  ;;  %v626_v17 = vmax.f32 %v577_v13, 0.0 }
 0x243   :  { %814 = vst.msk [vmem:[%s1460_s7 + $0x10] sm:$0xff] %vm811_vm2, %v737_v11 }
 0x246   :  { %v578_v14 = vpop.f32.mrf.mxu2 }
 0x247   :  { %v579_v15 = vadd.f32 %v1217_v12, %v578_v14 }
 0x248   :  { %v738_v16 = vpop.f32.mrf.mxu3 }
 0x249   :  { %v627_v18 = vmax.f32 %v579_v15, 0.0  ;;  %v739_v19 = vadd.f32 %v1270_v62, %v738_v16 }
 0x24b   :  { %v648_v20 = vpack.c.bf16 %v627_v18, %v626_v17  ;;  %815 = vst.msk [vmem:[%s1460_s7 + $0x18] sm:$0xff] %vm811_vm2, %v739_v19 }
 0x24d   :  { %939 = vmatmul.msk.bf16.gmra.mxu3 %vm261_vm1, %v648_v20 }
 0x24e   :  { %v581_v21 = vpop.f32.mrf.mxu2 }
 0x24f   :  { %v582_v24 = vadd.f32 %v1217_v12, %v581_v21 }
 0x250   :  { %v741_v22 = vpop.f32.mrf.mxu3 }
 0x251   :  { %v742_v23 = vadd.f32 %v1270_v62, %v741_v22  ;;  %v628_v28 = vmax.f32 %v582_v24, 0.0 }
 0x253   :  { %816 = vst.msk [vmem:[%s1460_s7 + $0x20] sm:$0xff] %vm811_vm2, %v742_v23 }
 0x256   :  { %v583_v25 = vpop.f32.mrf.mxu2 }
 0x257   :  { %v584_v26 = vadd.f32 %v1217_v12, %v583_v25 }
 0x258   :  { %v743_v27 = vpop.f32.mrf.mxu3 }
 0x259   :  { %v629_v29 = vmax.f32 %v584_v26, 0.0  ;;  %v744_v30 = vadd.f32 %v1270_v62, %v743_v27 }
 0x25b   :  { %v649_v32 = vpack.c.bf16 %v629_v29, %v628_v28  ;;  %817 = vst.msk [vmem:[%s1460_s7 + $0x28] sm:$0xff] %vm811_vm2, %v744_v30 }
 0x25d   :  { %940 = vmatmul.msk.bf16.gmra.mxu3 %vm261_vm1, %v649_v32 }
 0x25e   :  { %v586_v33 = vpop.f32.mrf.mxu2 }
 0x25f   :  { %v587_v36 = vadd.f32 %v1217_v12, %v586_v33 }
 0x260   :  { %v746_v34 = vpop.f32.mrf.mxu3 }
 0x261   :  { %v747_v35 = vadd.f32 %v1270_v62, %v746_v34  ;;  %v630_v41 = vmax.f32 %v587_v36, 0.0 }
 0x263   :  { %818 = vst.msk [vmem:[%s1460_s7 + $0x30] sm:$0xff] %vm811_vm2, %v747_v35 }
 0x266   :  { %v588_v38 = vpop.f32.mrf.mxu2 }
 0x267   :  { %v589_v39 = vadd.f32 %v1217_v12, %v588_v38 }
 0x268   :  { %v748_v40 = vpop.f32.mrf.mxu3 }
 0x269   :  { %v631_v42 = vmax.f32 %v589_v39, 0.0  ;;  %v749_v43 = vadd.f32 %v1270_v62, %v748_v40 }
 0x26b   :  { %v650_v44 = vpack.c.bf16 %v631_v42, %v630_v41  ;;  %819 = vst.msk [vmem:[%s1460_s7 + $0x38] sm:$0xff] %vm811_vm2, %v749_v43 }
 0x26d   :  { %941 = vmatmul.msk.bf16.gmra.mxu3 %vm261_vm1, %v650_v44 }
 0x26e   :  { %v591_v45 = vpop.f32.mrf.mxu2 }
 0x26f   :  { %v592_v48 = vadd.f32 %v1217_v12, %v591_v45 }
 0x270   :  { %v751_v46 = vpop.f32.mrf.mxu3 }
 0x271   :  { %v752_v47 = vadd.f32 %v1270_v62, %v751_v46  ;;  %v632_v52 = vmax.f32 %v592_v48, 0.0 }
 0x273   :  { %820 = vst.msk [vmem:[%s1460_s7 + $0x40] sm:$0xff] %vm811_vm2, %v752_v47 }
 0x276   :  { %v593_v49 = vpop.f32.mrf.mxu2 }
 0x277   :  { %v594_v50 = vadd.f32 %v1217_v12, %v593_v49 }
 0x278   :  { %v753_v51 = vpop.f32.mrf.mxu3 }
 0x279   :  { %v633_v37 = vmax.f32 %v594_v50, 0.0  ;;  %v754_v53 = vadd.f32 %v1270_v62, %v753_v51 }
 0x27b   :  { %v651_v54 = vpack.c.bf16 %v633_v37, %v632_v52  ;;  %821 = vst.msk [vmem:[%s1460_s7 + $0x48] sm:$0xff] %vm811_vm2, %v754_v53 }
 0x27d   :  { %942 = vmatmul.msk.bf16.gmra.mxu3 %vm261_vm1, %v651_v54 }
 0x27e   :  { %v596_v55 = vpop.f32.mrf.mxu2 }
 0x27f   :  { %v597_v58 = vadd.f32 %v1217_v12, %v596_v55 }
 0x280   :  { %v756_v56 = vpop.f32.mrf.mxu3 }
 0x281   :  { %v757_v57 = vadd.f32 %v1270_v62, %v756_v56  ;;  %v634_v63 = vmax.f32 %v597_v58, 0.0 }
 0x283   :  { %822 = vst.msk [vmem:[%s1460_s7 + $0x50] sm:$0xff] %vm811_vm2, %v757_v57 }
 0x286   :  { %v598_v59 = vpop.f32.mrf.mxu2 }
 0x287   :  { %v599_v60 = vadd.f32 %v1217_v12, %v598_v59 }
 0x288   :  { %v758_v61 = vpop.f32.mrf.mxu3 }
 0x289   :  { %v635_v0 = vmax.f32 %v599_v60, 0.0  ;;  %v759_v1 = vadd.f32 %v1270_v62, %v758_v61 }
 0x28b   :  { %v652_v31 = vpack.c.bf16 %v635_v0, %v634_v63  ;;  %823 = vst.msk [vmem:[%s1460_s7 + $0x58] sm:$0xff] %vm811_vm2, %v759_v1 }
 0x28d   :  { %943 = vmatmul.msk.bf16.gmra.mxu3 %vm261_vm1, %v652_v31 }
 0x28e   :  { %v601_v2 = vpop.f32.mrf.mxu2 }
 0x28f   :  { %v602_v5 = vadd.f32 %v1217_v12, %v601_v2 }
 0x290   :  { %v761_v3 = vpop.f32.mrf.mxu3 }
 0x291   :  { %v762_v4 = vadd.f32 %v1270_v62, %v761_v3  ;;  %v636_v9 = vmax.f32 %v602_v5, 0.0 }
 0x293   :  { %824 = vst.msk [vmem:[%s1460_s7 + $0x60] sm:$0xff] %vm811_vm2, %v762_v4 }
 0x296   :  { %v603_v6 = vpop.f32.mrf.mxu2 }
 0x297   :  { %v604_v7 = vadd.f32 %v1217_v12, %v603_v6 }
 0x298   :  { %v763_v8 = vpop.f32.mrf.mxu3 }
 0x299   :  { %v637_v10 = vmax.f32 %v604_v7, 0.0  ;;  %v764_v11 = vadd.f32 %v1270_v62, %v763_v8 }
 0x29b   :  { %v653_v13 = vpack.c.bf16 %v637_v10, %v636_v9  ;;  %825 = vst.msk [vmem:[%s1460_s7 + $0x68] sm:$0xff] %vm811_vm2, %v764_v11 }
 0x29d   :  { %944 = vmatmul.msk.bf16.gmra.mxu3 %vm261_vm1, %v653_v13 }
 0x2a0   :  { %v766_v14 = vpop.f32.mrf.mxu3 }
 0x2a1   :  { %v767_v15 = vadd.f32 %v1270_v62, %v766_v14 }
 0x2a3   :  { %826 = vst.msk [vmem:[%s1460_s7 + $0x70] sm:$0xff] %vm811_vm2, %v767_v15 }
 0x2a8   :  { %v768_v12 = vpop.f32.mrf.mxu3 }
 0x2a9   :  { %v769_v16 = vadd.f32 %v1270_v62, %v768_v12 }
 0x2ab   :  { %827 = vst.msk [vmem:[%s1460_s7 + $0x78] sm:$0xff] %vm811_vm2, %v769_v16 }
 0x2b0   :  { %v771_v17 = vpop.f32.mrf.mxu3 }
 0x2b1   :  { %v772_v18 = vadd.f32 %v1270_v62, %v771_v17 }
 0x2b3   :  { %828 = vst.msk [vmem:[%s1460_s7 + $0x80] sm:$0xff] %vm811_vm2, %v772_v18 }
 0x2b8   :  { %v773_v19 = vpop.f32.mrf.mxu3 }
 0x2b9   :  { %v774_v20 = vadd.f32 %v1270_v62, %v773_v19 }
 0x2bb   :  { %829 = vst.msk [vmem:[%s1460_s7 + $0x88] sm:$0xff] %vm811_vm2, %v774_v20 }
 0x2c0   :  { %v776_v21 = vpop.f32.mrf.mxu3 }
 0x2c1   :  { %v777_v22 = vadd.f32 %v1270_v62, %v776_v21 }
 0x2c3   :  { %830 = vst.msk [vmem:[%s1460_s7 + $0x90] sm:$0xff] %vm811_vm2, %v777_v22 }
 0x2c8   :  { %v778_v23 = vpop.f32.mrf.mxu3 }
 0x2c9   :  { %v779_v24 = vadd.f32 %v1270_v62, %v778_v23 }
 0x2cb   :  { %831 = vst.msk [vmem:[%s1460_s7 + $0x98] sm:$0xff] %vm811_vm2, %v779_v24 }
 0x2d0   :  { %v781_v25 = vpop.f32.mrf.mxu3 }
 0x2d1   :  { %v782_v26 = vadd.f32 %v1270_v62, %v781_v25 }
 0x2d3   :  { %832 = vst.msk [vmem:[%s1460_s7 + $0xa0] sm:$0xff] %vm811_vm2, %v782_v26 }
 0x2d8   :  { %v783_v27 = vpop.f32.mrf.mxu3 }
 0x2d9   :  { %v784_v28 = vadd.f32 %v1270_v62, %v783_v27 }
 0x2db   :  { %833 = vst.msk [vmem:[%s1460_s7 + $0xa8] sm:$0xff] %vm811_vm2, %v784_v28 }
 0x2e0   :  { %v786_v29 = vpop.f32.mrf.mxu3 }
 0x2e1   :  { %v787_v30 = vadd.f32 %v1270_v62, %v786_v29 }
 0x2e3   :  { %834 = vst.msk [vmem:[%s1460_s7 + $0xb0] sm:$0xff] %vm811_vm2, %v787_v30 }
 0x2e8   :  { %v788_v32 = vpop.f32.mrf.mxu3 }
 0x2e9   :  { %v789_v33 = vadd.f32 %v1270_v62, %v788_v32 }
 0x2eb   :  { %835 = vst.msk [vmem:[%s1460_s7 + $0xb8] sm:$0xff] %vm811_vm2, %v789_v33 }
 0x2f0   :  { %v791_v34 = vpop.f32.mrf.mxu3 }
 0x2f1   :  { %v792_v35 = vadd.f32 %v1270_v62, %v791_v34 }
 0x2f3   :  { %836 = vst.msk [vmem:[%s1460_s7 + $0xc0] sm:$0xff] %vm811_vm2, %v792_v35 }
 0x2f8   :  { %v793_v36 = vpop.f32.mrf.mxu3 }
 0x2f9   :  { %v794_v38 = vadd.f32 %v1270_v62, %v793_v36 }
 0x2fb   :  { %837 = vst.msk [vmem:[%s1460_s7 + $0xc8] sm:$0xff] %vm811_vm2, %v794_v38 }
 0x300   :  { %v796_v39 = vpop.f32.mrf.mxu3 }
 0x301   :  { %v797_v40 = vadd.f32 %v1270_v62, %v796_v39 }
 0x303   :  { %838 = vst.msk [vmem:[%s1460_s7 + $0xd0] sm:$0xff] %vm811_vm2, %v797_v40 }
 0x308   :  { %v798_v41 = vpop.f32.mrf.mxu3 }
 0x309   :  { %v799_v42 = vadd.f32 %v1270_v62, %v798_v41 }
 0x30b   :  { %839 = vst.msk [vmem:[%s1460_s7 + $0xd8] sm:$0xff] %vm811_vm2, %v799_v42 }
 0x310   :  { %v801_v43 = vpop.f32.mrf.mxu3 }
 0x311   :  { %v802_v44 = vadd.f32 %v1270_v62, %v801_v43 }
 0x313   :  { %840 = vst.msk [vmem:[%s1460_s7 + $0xe0] sm:$0xff] %vm811_vm2, %v802_v44 }
 0x318   :  { %v803_v45 = vpop.f32.mrf.mxu3 }
 0x319   :  { %v804_v46 = vadd.f32 %v1270_v62, %v803_v45 }
 0x31b   :  { %841 = vst.msk [vmem:[%s1460_s7 + $0xe8] sm:$0xff] %vm811_vm2, %v804_v46 }
 0x320   :  { %v806_v47 = vpop.f32.mrf.mxu3 }
 0x321   :  { %v807_v48 = vadd.f32 %v1270_v62, %v806_v47 }
 0x323   :  { %842 = vst.msk [vmem:[%s1460_s7 + $0xf0] sm:$0xff] %vm811_vm2, %v807_v48 }
 0x328   :  { %v808_v49 = vpop.f32.mrf.mxu3 }
 0x329   :  { %v809_v50 = vadd.f32 %v1270_v62, %v808_v49 }
 0x32b   :  { %843 = vst.msk [vmem:[%s1460_s7 + $0xf8] sm:$0xff] %vm811_vm2, %v809_v50 }

</bundles_post_ra>
